<compile_context>
chip_gen: v7x
topology: tpu7x:2x2x1
jax: 0.10.0
libtpu: 0.0.40
codegen_flags: <defaults>
</compile_context>

<pallas_src>
import functools

import numpy as np
import jax
import jax.numpy as jnp
from jax import lax
from jax.experimental import pallas as pl
from jax.experimental.pallas import tpu as pltpu


# ---------------------------------------------------------------- helpers

def _avgpool2_matrix(h: int, w: int) -> np.ndarray:
    """(H*W, (H/2)*(W/2)) matrix reproducing F.avg_pool2d(kernel=2, stride=2)
    on a row-major flattened HxW spatial slab."""
    h2, w2 = h // 2, w // 2
    m = np.zeros((h * w, h2 * w2), dtype=np.float32)
    for y in range(h):
        for x in range(w):
            m[y * w + x, (y // 2) * w2 + (x // 2)] = 0.25
    return m


def _tap_masks(h: int, w: int, b_tile: int) -> np.ndarray:
    """(8, 1, B*H*W) f32 border masks for the 8 non-center 3x3 taps (row-major
    over (dy, dx)).  They also zero the positions where a lane-axis roll would
    wrap across image boundaries within the batched slab."""
    hw = h * w
    L = b_tile * hw
    p = np.arange(L) % hw
    yy, xx = p // w, p % w
    masks = []
    for dy in (-1, 0, 1):
        for dx in (-1, 0, 1):
            if dy == 0 and dx == 0:
                continue
            m = ((yy + dy >= 0) & (yy + dy < h) &
                 (xx + dx >= 0) & (xx + dx < w)).astype(np.float32)
            masks.append(m)
    return np.stack(masks).reshape(8, 1, L)


def _pick_batch_tile(n: int, hw: int, hw4: int, max_lanes: int = 2048) -> int:
    """Smallest divisor of n that makes the output lane width >= 128 while
    keeping the activation slab <= max_lanes lanes (lane-dense stores are the
    biggest measured lever; grid-step overhead amortizes too)."""
    cands = [d for d in range(1, n + 1) if n % d == 0 and d * hw <= max_lanes]
    if not cands:
        return 1
    for d in cands:
        if d * hw4 >= 128:
            return d
    return cands[-1]


def _spectral_normalize(wt, u):
    """Eval-mode torch spectral_norm: sigma computed from the stored u."""
    wm = wt.reshape(wt.shape[0], -1)
    v = jnp.matmul(u, wm, precision=lax.Precision.HIGHEST)      # W^T u
    v = v / (jnp.linalg.norm(v) + 1e-12)
    wv = jnp.matmul(wm, v, precision=lax.Precision.HIGHEST)
    sigma = jnp.sum(u * wv)
    return wt / sigma


# ---------------------------------------------------------------- kernel

def _make_block_kernel(h: int, w: int, b_tile: int):
    hw = h * w
    L = b_tile * hw
    # (lane-roll amount, mask row or None) for the nine taps, row-major (dy,dx).
    taps = []
    mi = 0
    for dy in (-1, 0, 1):
        for dx in (-1, 0, 1):
            if dy == 0 and dx == 0:
                taps.append((0, None))
            else:
                taps.append(((-(dy * w + dx)) % L, mi))
                mi += 1

    def kernel(x_ref, w1_ref, b1_ref, w2_ref, b2sc_ref, wsc_ref, mask_ref,
               pool_ref, o_ref):
        x = x_ref[0]                                          # (cin_p, L) f32

        # Shortcut channel-mix first: depends only on x, so its small MXU push
        # is fully hidden under the residual conv chain.
        sc = jnp.dot(wsc_ref[...], x.astype(wsc_ref.dtype),
                     preferred_element_type=jnp.float32)      # (cout, L) f32

        def shifted_taps(a):
            # a: (c, L) f32 -> (9*c, L): nine shifted / border-masked copies
            # stacked along sublanes so each conv is ONE K=9*c MXU matmul.
            parts = []
            for amount, m in taps:
                t = a if amount == 0 else pltpu.roll(a, amount, axis=1)
                if m is not None:
                    t = t * mask_ref[m]                       # (1, L) bcast
                parts.append(t)
            return jnp.concatenate(parts, axis=0)

        # Residual branch: c1 -> ReLU -> c2 (one matmul per conv, f32 accum).
        h1 = jnp.dot(w1_ref[...], shifted_taps(x).astype(w1_ref.dtype),
                     preferred_element_type=jnp.float32) + b1_ref[...]
        h1 = jnp.maximum(h1, 0.0)                             # (cout, L) f32
        y = jnp.dot(w2_ref[...], shifted_taps(h1).astype(w2_ref.dtype),
                    preferred_element_type=jnp.float32)

        # avg_pool2 commutes with the 1x1 shortcut conv and with the biases,
        # so both branches share ONE pooling matmul (block-diag pool matrix).
        y = y + sc + b2sc_ref[...]                            # (cout, L) f32
        o_ref[0] = jnp.dot(y.astype(pool_ref.dtype), pool_ref[...],
                           preferred_element_type=jnp.float32)

    return kernel


# ---------------------------------------------------------------- wrapper

def optimized_block_forward(params, x, compute_dtype=jnp.float32):
    """_OptimizedBlock.forward(x).  NCHW float32 in / out.  compute_dtype is
    the MXU operand dtype (use jnp.bfloat16 on v6e/v7x; accumulation stays f32)."""
    n, cin, h, w = x.shape
    cout = params["w1"].shape[0]
    hw, hw4 = h * w, (h // 2) * (w // 2)
    b_tile = _pick_batch_tile(n, hw, hw4)
    n_tiles = n // b_tile
    L, L4 = b_tile * hw, b_tile * hw4
    cin_p = ((cin + 7) // 8) * 8          # sublane-align input channels

    # Fold eval-mode spectral norm into the conv weights (plain-JAX glue).
    w1 = _spectral_normalize(params["w1"], params["u1"])
    w2 = _spectral_normalize(params["w2"], params["u2"])
    wsc = _spectral_normalize(params["wsc"], params["usc"])

    # Zero-pad input channels so the tap stack is built from 8-row pieces.
    w1 = jnp.pad(w1, ((0, 0), (0, cin_p - cin), (0, 0), (0, 0)))
    wsc = jnp.pad(wsc, ((0, 0), (0, cin_p - cin), (0, 0), (0, 0)))

    # Tap-concatenated weights: column block t = 3*(dy+1) + (dx+1).
    w1_cat = jnp.transpose(w1, (0, 2, 3, 1)).reshape(cout, 9 * cin_p)
    w2_cat = jnp.transpose(w2, (0, 2, 3, 1)).reshape(cout, 9 * cout)
    wsc_m = wsc[:, :, 0, 0]                                   # (cout, cin_p)
    w1_cat = w1_cat.astype(compute_dtype)
    w2_cat = w2_cat.astype(compute_dtype)
    wsc_m = wsc_m.astype(compute_dtype)
    b1 = params["b1"][:, None].astype(jnp.float32)
    b2sc = (params["b2"] + params["bsc"])[:, None].astype(jnp.float32)

    masks = jnp.asarray(_tap_masks(h, w, b_tile))             # (8,1,L) f32
    pool = jnp.asarray(np.kron(np.eye(b_tile, dtype=np.float32),
                               _avgpool2_matrix(h, w))).astype(compute_dtype)

    # Lane layout (cin_p, b*hw + y*w + x): batch rides the lane axis so the
    # output block is lane-dense and the per-grid-step overhead is amortized.
    x_p = jnp.pad(x.astype(jnp.float32),
                  ((0, 0), (0, cin_p - cin), (0, 0), (0, 0)))
    x_t = (x_p.reshape(n_tiles, b_tile, cin_p, hw)
              .transpose(0, 2, 1, 3).reshape(n_tiles, cin_p, L))

    out = pl.pallas_call(
        _make_block_kernel(h, w, b_tile),
        out_shape=jax.ShapeDtypeStruct((n_tiles, cout, L4), jnp.float32),
        grid_spec=pltpu.PrefetchScalarGridSpec(
            num_scalar_prefetch=0,
            grid=(n_tiles,),
            in_specs=[
                pl.BlockSpec((1, cin_p, L), lambda i: (i, 0, 0)),
                pl.BlockSpec((cout, 9 * cin_p), lambda i: (0, 0)),
                pl.BlockSpec((cout, 1), lambda i: (0, 0)),
                pl.BlockSpec((cout, 9 * cout), lambda i: (0, 0)),
                pl.BlockSpec((cout, 1), lambda i: (0, 0)),
                pl.BlockSpec((cout, cin_p), lambda i: (0, 0)),
                pl.BlockSpec((8, 1, L), lambda i: (0, 0, 0)),
                pl.BlockSpec((L, L4), lambda i: (0, 0)),
            ],
            out_specs=pl.BlockSpec((1, cout, L4), lambda i: (i, 0, 0)),
        ),
        compiler_params=pltpu.CompilerParams(
            dimension_semantics=("parallel",),
            vmem_limit_bytes=32 * 1024 * 1024),
    )(x_t, w1_cat, b1, w2_cat, b2sc, wsc_m, masks, pool)

    # Un-interleave batch from the lane axis (small wrapper-side transpose).
    return (out.reshape(n_tiles, cout, b_tile, hw4)
               .transpose(0, 2, 1, 3).reshape(n, cout, h // 2, w // 2))


# ---------------------------------------------------------------- reference

def ref_forward(params, x):
    w1 = _spectral_normalize(params["w1"], params["u1"])
    w2 = _spectral_normalize(params["w2"], params["u2"])
    wsc = _spectral_normalize(params["wsc"], params["usc"])

    def conv(a, wt, b, pad):
        o = lax.conv_general_dilated(
            a, wt, (1, 1), ((pad, pad), (pad, pad)),
            dimension_numbers=("NCHW", "OIHW", "NCHW"),
            precision=lax.Precision.HIGHEST)
        return o + b[None, :, None, None]

    def avgpool2(a):
        return 0.25 * (a[:, :, 0::2, 0::2] + a[:, :, 0::2, 1::2]
                       + a[:, :, 1::2, 0::2] + a[:, :, 1::2, 1::2])

    res = avgpool2(conv(jax.nn.relu(conv(x, w1, params["b1"], 1)),
                        w2, params["b2"], 1))
    sc = conv(avgpool2(x), wsc, params["bsc"], 0)
    return sc + res


# ---------------------------------------------------------------- main

if __name__ == "__main__":
    key = jax.random.PRNGKey(0)
    N, Cin, Cout, H, W = 2, 4, 8, 16, 16

    ks = jax.random.split(key, 12)

    def unit(k, n):
        v = jax.random.normal(k, (n,), jnp.float32)
        return v / jnp.linalg.norm(v)

    params = {
        "w1": 0.2 * jax.random.normal(ks[0], (Cout, Cin, 3, 3), jnp.float32),
        "b1": 0.05 * jax.random.normal(ks[1], (Cout,), jnp.float32),
        "u1": unit(ks[2], Cout),
        "w2": 0.2 * jax.random.normal(ks[3], (Cout, Cout, 3, 3), jnp.float32),
        "b2": 0.05 * jax.random.normal(ks[4], (Cout,), jnp.float32),
        "u2": unit(ks[5], Cout),
        "wsc": 0.3 * jax.random.normal(ks[6], (Cout, Cin, 1, 1), jnp.float32),
        "bsc": 0.05 * jax.random.normal(ks[7], (Cout,), jnp.float32),
        "usc": unit(ks[8], Cout),
    }
    x = jax.random.normal(ks[9], (N, Cin, H, W), jnp.float32)

    ref = jax.block_until_ready(ref_forward(params, x))

    # f32 compute path: tight tolerance (catches tap-offset / mask errors).
    fwd_f32 = jax.jit(functools.partial(optimized_block_forward,
                                        compute_dtype=jnp.float32))
    out = jax.block_until_ready(fwd_f32(params, x))
    assert out.shape == (N, Cout, H // 2, W // 2)
    err = float(jnp.max(jnp.abs(out - ref)))
    assert err < 2e-4, f"f32 path max abs err {err}"

    # bf16 MXU-operand path (native-bf16 MXU on v6e/v7x); f32 accumulation.
    fwd_bf16 = jax.jit(functools.partial(optimized_block_forward,
                                         compute_dtype=jnp.bfloat16))
    out16 = jax.block_until_ready(fwd_bf16(params, x))
    err16 = float(jnp.max(jnp.abs(out16 - ref)))
    assert err16 < 1e-1, f"bf16 path max abs err {err16}"

    print("KERNEL_OK")
</pallas_src>

<mosaic_0001>
module attributes {stable_mosaic.version = 11 : i64} {
  func.func @kernel(%arg0: i32, %arg1: memref<1x8x512xf32, #tpu.memory_space<vmem>>, %arg2: memref<8x72xf32, #tpu.memory_space<vmem>>, %arg3: memref<8x1xf32, #tpu.memory_space<vmem>>, %arg4: memref<8x72xf32, #tpu.memory_space<vmem>>, %arg5: memref<8x1xf32, #tpu.memory_space<vmem>>, %arg6: memref<8x8xf32, #tpu.memory_space<vmem>>, %arg7: memref<8x1x512xf32, #tpu.memory_space<vmem>>, %arg8: memref<512x128xf32, #tpu.memory_space<vmem>>, %arg9: memref<1x8x128xf32, #tpu.memory_space<vmem>>) attributes {dimension_semantics = [#tpu.dimension_semantics<parallel>], iteration_bounds = array<i64: 1>, scalar_prefetch = 0 : i64, scratch_operands = 0 : i64, tpu.core_type = #tpu.core_type<tc>, window_params = [{transform_indices = @transform_0, window_bounds = array<i64: 1, 8, 512>}, {pipeline_mode = #tpu.pipeline_mode<synchronous>, transform_indices = @transform_1, window_bounds = array<i64: 8, 72>}, {pipeline_mode = #tpu.pipeline_mode<synchronous>, transform_indices = @transform_2, window_bounds = array<i64: 8, 1>}, {pipeline_mode = #tpu.pipeline_mode<synchronous>, transform_indices = @transform_3, window_bounds = array<i64: 8, 72>}, {pipeline_mode = #tpu.pipeline_mode<synchronous>, transform_indices = @transform_4, window_bounds = array<i64: 8, 1>}, {pipeline_mode = #tpu.pipeline_mode<synchronous>, transform_indices = @transform_5, window_bounds = array<i64: 8, 8>}, {pipeline_mode = #tpu.pipeline_mode<synchronous>, transform_indices = @transform_6, window_bounds = array<i64: 8, 1, 512>}, {pipeline_mode = #tpu.pipeline_mode<synchronous>, transform_indices = @transform_7, window_bounds = array<i64: 512, 128>}, {transform_indices = @transform_8, window_bounds = array<i64: 1, 8, 128>}]} {
    %c0 = arith.constant 0 : index
    %c0_0 = arith.constant 0 : index
    %c0_1 = arith.constant 0 : index
    %0 = vector.load %arg1[%c0, %c0_0, %c0_1] : memref<1x8x512xf32, #tpu.memory_space<vmem>>, vector<1x8x512xf32>
    %1 = vector.shape_cast %0 : vector<1x8x512xf32> to vector<8x512xf32>
    %c0_2 = arith.constant 0 : index
    %c0_3 = arith.constant 0 : index
    %2 = vector.load %arg6[%c0_2, %c0_3] : memref<8x8xf32, #tpu.memory_space<vmem>>, vector<8x8xf32>
    %cst = arith.constant dense<0.000000e+00> : vector<8x512xf32>
    %3 = tpu.matmul %2, %1, %cst {dimension_numbers = #tpu.dot_dimension_numbers<[1], [0], [0], [1], [0, 0, 1, 1], [], []>} : vector<8x8xf32>, vector<8x512xf32>, vector<8x512xf32> -> vector<8x512xf32>
    %c0_4 = arith.constant 0 : index
    %c0_5 = arith.constant 0 : index
    %4 = vector.load %arg2[%c0_4, %c0_5] : memref<8x72xf32, #tpu.memory_space<vmem>>, vector<8x72xf32>
    %c17_i32 = arith.constant 17 : i32
    %5 = tpu.dynamic_rotate %1 by %c17_i32 dim 1 : vector<8x512xf32>, i32 -> vector<8x512xf32>
    %c0_6 = arith.constant 0 : index
    %c0_7 = arith.constant 0 : index
    %c0_8 = arith.constant 0 : index
    %6 = vector.load %arg7[%c0_6, %c0_7, %c0_8] : memref<8x1x512xf32, #tpu.memory_space<vmem>>, vector<1x1x512xf32>
    %7 = vector.shape_cast %6 : vector<1x1x512xf32> to vector<1x512xf32>
    %8 = vector.broadcast %7 : vector<1x512xf32> to vector<8x512xf32>
    %9 = arith.mulf %5, %8 : vector<8x512xf32>
    %c16_i32 = arith.constant 16 : i32
    %10 = tpu.dynamic_rotate %1 by %c16_i32 dim 1 : vector<8x512xf32>, i32 -> vector<8x512xf32>
    %c1 = arith.constant 1 : index
    %c0_9 = arith.constant 0 : index
    %c0_10 = arith.constant 0 : index
    %11 = vector.load %arg7[%c1, %c0_9, %c0_10] : memref<8x1x512xf32, #tpu.memory_space<vmem>>, vector<1x1x512xf32>
    %12 = vector.shape_cast %11 : vector<1x1x512xf32> to vector<1x512xf32>
    %13 = vector.broadcast %12 : vector<1x512xf32> to vector<8x512xf32>
    %14 = arith.mulf %10, %13 : vector<8x512xf32>
    %c15_i32 = arith.constant 15 : i32
    %15 = tpu.dynamic_rotate %1 by %c15_i32 dim 1 : vector<8x512xf32>, i32 -> vector<8x512xf32>
    %c2 = arith.constant 2 : index
    %c0_11 = arith.constant 0 : index
    %c0_12 = arith.constant 0 : index
    %16 = vector.load %arg7[%c2, %c0_11, %c0_12] : memref<8x1x512xf32, #tpu.memory_space<vmem>>, vector<1x1x512xf32>
    %17 = vector.shape_cast %16 : vector<1x1x512xf32> to vector<1x512xf32>
    %18 = vector.broadcast %17 : vector<1x512xf32> to vector<8x512xf32>
    %19 = arith.mulf %15, %18 : vector<8x512xf32>
    %c1_i32 = arith.constant 1 : i32
    %20 = tpu.dynamic_rotate %1 by %c1_i32 dim 1 : vector<8x512xf32>, i32 -> vector<8x512xf32>
    %c3 = arith.constant 3 : index
    %c0_13 = arith.constant 0 : index
    %c0_14 = arith.constant 0 : index
    %21 = vector.load %arg7[%c3, %c0_13, %c0_14] : memref<8x1x512xf32, #tpu.memory_space<vmem>>, vector<1x1x512xf32>
    %22 = vector.shape_cast %21 : vector<1x1x512xf32> to vector<1x512xf32>
    %23 = vector.broadcast %22 : vector<1x512xf32> to vector<8x512xf32>
    %24 = arith.mulf %20, %23 : vector<8x512xf32>
    %c511_i32 = arith.constant 511 : i32
    %25 = tpu.dynamic_rotate %1 by %c511_i32 dim 1 : vector<8x512xf32>, i32 -> vector<8x512xf32>
    %c4 = arith.constant 4 : index
    %c0_15 = arith.constant 0 : index
    %c0_16 = arith.constant 0 : index
    %26 = vector.load %arg7[%c4, %c0_15, %c0_16] : memref<8x1x512xf32, #tpu.memory_space<vmem>>, vector<1x1x512xf32>
    %27 = vector.shape_cast %26 : vector<1x1x512xf32> to vector<1x512xf32>
    %28 = vector.broadcast %27 : vector<1x512xf32> to vector<8x512xf32>
    %29 = arith.mulf %25, %28 : vector<8x512xf32>
    %c497_i32 = arith.constant 497 : i32
    %30 = tpu.dynamic_rotate %1 by %c497_i32 dim 1 : vector<8x512xf32>, i32 -> vector<8x512xf32>
    %c5 = arith.constant 5 : index
    %c0_17 = arith.constant 0 : index
    %c0_18 = arith.constant 0 : index
    %31 = vector.load %arg7[%c5, %c0_17, %c0_18] : memref<8x1x512xf32, #tpu.memory_space<vmem>>, vector<1x1x512xf32>
    %32 = vector.shape_cast %31 : vector<1x1x512xf32> to vector<1x512xf32>
    %33 = vector.broadcast %32 : vector<1x512xf32> to vector<8x512xf32>
    %34 = arith.mulf %30, %33 : vector<8x512xf32>
    %c496_i32 = arith.constant 496 : i32
    %35 = tpu.dynamic_rotate %1 by %c496_i32 dim 1 : vector<8x512xf32>, i32 -> vector<8x512xf32>
    %c6 = arith.constant 6 : index
    %c0_19 = arith.constant 0 : index
    %c0_20 = arith.constant 0 : index
    %36 = vector.load %arg7[%c6, %c0_19, %c0_20] : memref<8x1x512xf32, #tpu.memory_space<vmem>>, vector<1x1x512xf32>
    %37 = vector.shape_cast %36 : vector<1x1x512xf32> to vector<1x512xf32>
    %38 = vector.broadcast %37 : vector<1x512xf32> to vector<8x512xf32>
    %39 = arith.mulf %35, %38 : vector<8x512xf32>
    %c495_i32 = arith.constant 495 : i32
    %40 = tpu.dynamic_rotate %1 by %c495_i32 dim 1 : vector<8x512xf32>, i32 -> vector<8x512xf32>
    %c7 = arith.constant 7 : index
    %c0_21 = arith.constant 0 : index
    %c0_22 = arith.constant 0 : index
    %41 = vector.load %arg7[%c7, %c0_21, %c0_22] : memref<8x1x512xf32, #tpu.memory_space<vmem>>, vector<1x1x512xf32>
    %42 = vector.shape_cast %41 : vector<1x1x512xf32> to vector<1x512xf32>
    %43 = vector.broadcast %42 : vector<1x512xf32> to vector<8x512xf32>
    %44 = arith.mulf %40, %43 : vector<8x512xf32>
    %45 = tpu.concatenate %9, %14, %19, %24, %1, %29, %34, %39, %44 in 0 : vector<8x512xf32>, vector<8x512xf32>, vector<8x512xf32>, vector<8x512xf32>, vector<8x512xf32>, vector<8x512xf32>, vector<8x512xf32>, vector<8x512xf32>, vector<8x512xf32> -> vector<72x512xf32>
    %cst_23 = arith.constant dense<0.000000e+00> : vector<8x512xf32>
    %46 = tpu.matmul %4, %45, %cst_23 {dimension_numbers = #tpu.dot_dimension_numbers<[1], [0], [0], [1], [0, 0, 1, 1], [], []>} : vector<8x72xf32>, vector<72x512xf32>, vector<8x512xf32> -> vector<8x512xf32>
    %c0_24 = arith.constant 0 : index
    %c0_25 = arith.constant 0 : index
    %47 = vector.load %arg3[%c0_24, %c0_25] : memref<8x1xf32, #tpu.memory_space<vmem>>, vector<8x1xf32>
    %48 = vector.broadcast %47 : vector<8x1xf32> to vector<8x512xf32>
    %49 = arith.addf %46, %48 : vector<8x512xf32>
    %cst_26 = arith.constant 0.000000e+00 : f32
    %50 = vector.broadcast %cst_26 : f32 to vector<8x512xf32>
    %51 = arith.maximumf %49, %50 : vector<8x512xf32>
    %c0_27 = arith.constant 0 : index
    %c0_28 = arith.constant 0 : index
    %52 = vector.load %arg4[%c0_27, %c0_28] : memref<8x72xf32, #tpu.memory_space<vmem>>, vector<8x72xf32>
    %c17_i32_29 = arith.constant 17 : i32
    %53 = tpu.dynamic_rotate %51 by %c17_i32_29 dim 1 : vector<8x512xf32>, i32 -> vector<8x512xf32>
    %c0_30 = arith.constant 0 : index
    %c0_31 = arith.constant 0 : index
    %c0_32 = arith.constant 0 : index
    %54 = vector.load %arg7[%c0_30, %c0_31, %c0_32] : memref<8x1x512xf32, #tpu.memory_space<vmem>>, vector<1x1x512xf32>
    %55 = vector.shape_cast %54 : vector<1x1x512xf32> to vector<1x512xf32>
    %56 = vector.broadcast %55 : vector<1x512xf32> to vector<8x512xf32>
    %57 = arith.mulf %53, %56 : vector<8x512xf32>
    %c16_i32_33 = arith.constant 16 : i32
    %58 = tpu.dynamic_rotate %51 by %c16_i32_33 dim 1 : vector<8x512xf32>, i32 -> vector<8x512xf32>
    %c1_34 = arith.constant 1 : index
    %c0_35 = arith.constant 0 : index
    %c0_36 = arith.constant 0 : index
    %59 = vector.load %arg7[%c1_34, %c0_35, %c0_36] : memref<8x1x512xf32, #tpu.memory_space<vmem>>, vector<1x1x512xf32>
    %60 = vector.shape_cast %59 : vector<1x1x512xf32> to vector<1x512xf32>
    %61 = vector.broadcast %60 : vector<1x512xf32> to vector<8x512xf32>
    %62 = arith.mulf %58, %61 : vector<8x512xf32>
    %c15_i32_37 = arith.constant 15 : i32
    %63 = tpu.dynamic_rotate %51 by %c15_i32_37 dim 1 : vector<8x512xf32>, i32 -> vector<8x512xf32>
    %c2_38 = arith.constant 2 : index
    %c0_39 = arith.constant 0 : index
    %c0_40 = arith.constant 0 : index
    %64 = vector.load %arg7[%c2_38, %c0_39, %c0_40] : memref<8x1x512xf32, #tpu.memory_space<vmem>>, vector<1x1x512xf32>
    %65 = vector.shape_cast %64 : vector<1x1x512xf32> to vector<1x512xf32>
    %66 = vector.broadcast %65 : vector<1x512xf32> to vector<8x512xf32>
    %67 = arith.mulf %63, %66 : vector<8x512xf32>
    %c1_i32_41 = arith.constant 1 : i32
    %68 = tpu.dynamic_rotate %51 by %c1_i32_41 dim 1 : vector<8x512xf32>, i32 -> vector<8x512xf32>
    %c3_42 = arith.constant 3 : index
    %c0_43 = arith.constant 0 : index
    %c0_44 = arith.constant 0 : index
    %69 = vector.load %arg7[%c3_42, %c0_43, %c0_44] : memref<8x1x512xf32, #tpu.memory_space<vmem>>, vector<1x1x512xf32>
    %70 = vector.shape_cast %69 : vector<1x1x512xf32> to vector<1x512xf32>
    %71 = vector.broadcast %70 : vector<1x512xf32> to vector<8x512xf32>
    %72 = arith.mulf %68, %71 : vector<8x512xf32>
    %c511_i32_45 = arith.constant 511 : i32
    %73 = tpu.dynamic_rotate %51 by %c511_i32_45 dim 1 : vector<8x512xf32>, i32 -> vector<8x512xf32>
    %c4_46 = arith.constant 4 : index
    %c0_47 = arith.constant 0 : index
    %c0_48 = arith.constant 0 : index
    %74 = vector.load %arg7[%c4_46, %c0_47, %c0_48] : memref<8x1x512xf32, #tpu.memory_space<vmem>>, vector<1x1x512xf32>
    %75 = vector.shape_cast %74 : vector<1x1x512xf32> to vector<1x512xf32>
    %76 = vector.broadcast %75 : vector<1x512xf32> to vector<8x512xf32>
    %77 = arith.mulf %73, %76 : vector<8x512xf32>
    %c497_i32_49 = arith.constant 497 : i32
    %78 = tpu.dynamic_rotate %51 by %c497_i32_49 dim 1 : vector<8x512xf32>, i32 -> vector<8x512xf32>
    %c5_50 = arith.constant 5 : index
    %c0_51 = arith.constant 0 : index
    %c0_52 = arith.constant 0 : index
    %79 = vector.load %arg7[%c5_50, %c0_51, %c0_52] : memref<8x1x512xf32, #tpu.memory_space<vmem>>, vector<1x1x512xf32>
    %80 = vector.shape_cast %79 : vector<1x1x512xf32> to vector<1x512xf32>
    %81 = vector.broadcast %80 : vector<1x512xf32> to vector<8x512xf32>
    %82 = arith.mulf %78, %81 : vector<8x512xf32>
    %c496_i32_53 = arith.constant 496 : i32
    %83 = tpu.dynamic_rotate %51 by %c496_i32_53 dim 1 : vector<8x512xf32>, i32 -> vector<8x512xf32>
    %c6_54 = arith.constant 6 : index
    %c0_55 = arith.constant 0 : index
    %c0_56 = arith.constant 0 : index
    %84 = vector.load %arg7[%c6_54, %c0_55, %c0_56] : memref<8x1x512xf32, #tpu.memory_space<vmem>>, vector<1x1x512xf32>
    %85 = vector.shape_cast %84 : vector<1x1x512xf32> to vector<1x512xf32>
    %86 = vector.broadcast %85 : vector<1x512xf32> to vector<8x512xf32>
    %87 = arith.mulf %83, %86 : vector<8x512xf32>
    %c495_i32_57 = arith.constant 495 : i32
    %88 = tpu.dynamic_rotate %51 by %c495_i32_57 dim 1 : vector<8x512xf32>, i32 -> vector<8x512xf32>
    %c7_58 = arith.constant 7 : index
    %c0_59 = arith.constant 0 : index
    %c0_60 = arith.constant 0 : index
    %89 = vector.load %arg7[%c7_58, %c0_59, %c0_60] : memref<8x1x512xf32, #tpu.memory_space<vmem>>, vector<1x1x512xf32>
    %90 = vector.shape_cast %89 : vector<1x1x512xf32> to vector<1x512xf32>
    %91 = vector.broadcast %90 : vector<1x512xf32> to vector<8x512xf32>
    %92 = arith.mulf %88, %91 : vector<8x512xf32>
    %93 = tpu.concatenate %57, %62, %67, %72, %51, %77, %82, %87, %92 in 0 : vector<8x512xf32>, vector<8x512xf32>, vector<8x512xf32>, vector<8x512xf32>, vector<8x512xf32>, vector<8x512xf32>, vector<8x512xf32>, vector<8x512xf32>, vector<8x512xf32> -> vector<72x512xf32>
    %cst_61 = arith.constant dense<0.000000e+00> : vector<8x512xf32>
    %94 = tpu.matmul %52, %93, %cst_61 {dimension_numbers = #tpu.dot_dimension_numbers<[1], [0], [0], [1], [0, 0, 1, 1], [], []>} : vector<8x72xf32>, vector<72x512xf32>, vector<8x512xf32> -> vector<8x512xf32>
    %95 = arith.addf %94, %3 : vector<8x512xf32>
    %c0_62 = arith.constant 0 : index
    %c0_63 = arith.constant 0 : index
    %96 = vector.load %arg5[%c0_62, %c0_63] : memref<8x1xf32, #tpu.memory_space<vmem>>, vector<8x1xf32>
    %97 = vector.broadcast %96 : vector<8x1xf32> to vector<8x512xf32>
    %98 = arith.addf %95, %97 : vector<8x512xf32>
    %c0_64 = arith.constant 0 : index
    %c0_65 = arith.constant 0 : index
    %99 = vector.load %arg8[%c0_64, %c0_65] : memref<512x128xf32, #tpu.memory_space<vmem>>, vector<512x128xf32>
    %cst_66 = arith.constant dense<0.000000e+00> : vector<8x128xf32>
    %100 = tpu.matmul %98, %99, %cst_66 {dimension_numbers = #tpu.dot_dimension_numbers<[1], [0], [0], [1], [0, 0, 1, 1], [], []>} : vector<8x512xf32>, vector<512x128xf32>, vector<8x128xf32> -> vector<8x128xf32>
    %c0_67 = arith.constant 0 : index
    %c0_68 = arith.constant 0 : index
    %c0_69 = arith.constant 0 : index
    %101 = vector.load %arg9[%c0_67, %c0_68, %c0_69] : memref<1x8x128xf32, #tpu.memory_space<vmem>>, vector<1x8x128xf32>
    %102 = vector.shape_cast %101 : vector<1x8x128xf32> to vector<8x128xf32>
    %103 = vector.shape_cast %100 : vector<8x128xf32> to vector<1x8x128xf32>
    tpu.vector_store %arg9[%c0_67, %c0_68, %c0_69], %103 {strides = array<i32>} : memref<1x8x128xf32, #tpu.memory_space<vmem>>, vector<1x8x128xf32>,
    return
  }
  func.func @transform_0(%arg0: i32) -> (i32, i32, i32) {
    %c0_i32 = arith.constant 0 : i32
    %c0_i32_0 = arith.constant 0 : i32
    %c0_i32_1 = arith.constant 0 : i32
    return %arg0, %c0_i32, %c0_i32_0 : i32, i32, i32
  }
  func.func @transform_1(%arg0: i32) -> (i32, i32) {
    %c0_i32 = arith.constant 0 : i32
    %c0_i32_0 = arith.constant 0 : i32
    %c0_i32_1 = arith.constant 0 : i32
    return %c0_i32, %c0_i32_0 : i32, i32
  }
  func.func @transform_2(%arg0: i32) -> (i32, i32) {
    %c0_i32 = arith.constant 0 : i32
    %c0_i32_0 = arith.constant 0 : i32
    %c0_i32_1 = arith.constant 0 : i32
    return %c0_i32, %c0_i32_0 : i32, i32
  }
  func.func @transform_3(%arg0: i32) -> (i32, i32) {
    %c0_i32 = arith.constant 0 : i32
    %c0_i32_0 = arith.constant 0 : i32
    %c0_i32_1 = arith.constant 0 : i32
    return %c0_i32, %c0_i32_0 : i32, i32
  }
  func.func @transform_4(%arg0: i32) -> (i32, i32) {
    %c0_i32 = arith.constant 0 : i32
    %c0_i32_0 = arith.constant 0 : i32
    %c0_i32_1 = arith.constant 0 : i32
    return %c0_i32, %c0_i32_0 : i32, i32
  }
  func.func @transform_5(%arg0: i32) -> (i32, i32) {
    %c0_i32 = arith.constant 0 : i32
    %c0_i32_0 = arith.constant 0 : i32
    %c0_i32_1 = arith.constant 0 : i32
    return %c0_i32, %c0_i32_0 : i32, i32
  }
  func.func @transform_6(%arg0: i32) -> (i32, i32, i32) {
    %c0_i32 = arith.constant 0 : i32
    %c0_i32_0 = arith.constant 0 : i32
    %c0_i32_1 = arith.constant 0 : i32
    %c0_i32_2 = arith.constant 0 : i32
    return %c0_i32, %c0_i32_0, %c0_i32_1 : i32, i32, i32
  }
  func.func @transform_7(%arg0: i32) -> (i32, i32) {
    %c0_i32 = arith.constant 0 : i32
    %c0_i32_0 = arith.constant 0 : i32
    %c0_i32_1 = arith.constant 0 : i32
    return %c0_i32, %c0_i32_0 : i32, i32
  }
  func.func @transform_8(%arg0: i32) -> (i32, i32, i32) {
    %c0_i32 = arith.constant 0 : i32
    %c0_i32_0 = arith.constant 0 : i32
    %c0_i32_1 = arith.constant 0 : i32
    return %arg0, %c0_i32, %c0_i32_0 : i32, i32, i32
  }
}

</mosaic_0001>

<bundles_post_ra>
// kernel: optimized_block_forward.1
= control target key start
LH: loop header
LB: loop body
LE: loop exit
PB: predicated region body
PF: predicated region fallthrough
CT: control target
= control target key end

     0   :  { %s1377_s9 = smov 17   ;;  %v1378_v4 = vmov 0.0   ;;  %vm34_vm0 = vcmask 64512   ;;  %s1381_s16 = smov 1   ;;  %v1385_v6 = vmov 0   ;;  %v189_v8 = vlaneseq  ;;  %s2150_s0 = inlined_call_operand.vmem [shape: f32[1,8,512], index: 0, kind: input, shape index: {}]   ;;  %s2151_s5 = inlined_call_operand.vmem [shape: f32[8,8], index: 5, kind: input, shape index: {}]   ;;  %s2152_s2 = inlined_call_operand.vmem [shape: f32[8,1], index: 2, kind: input, shape index: {}]   ;;  %s2153_s6 = inlined_call_operand.vmem [shape: f32[8,1,512], index: 6, kind: input, shape index: {}]   ;;  %s2154_s1 = inlined_call_operand.vmem [shape: f32[8,72], index: 1, kind: input, shape index: {}]   ;;  %s2155_s4 = inlined_call_operand.vmem [shape: f32[8,1], index: 4, kind: input, shape index: {}]   ;;  %s2156_s7 = inlined_call_operand.vmem [shape: f32[512,128], index: 7, kind: input, shape index: {}]   ;;  %s2157_s3 = inlined_call_operand.vmem [shape: f32[8,72], index: 3, kind: input, shape index: {}]   ;;  %s2158_s8 = inlined_call_operand.vmem [shape: f32[1,8,128], index: 8, kind: output, shape index: {}]  }
   0x1   :  { %v1435_v0 = vld [vmem:[%s2150_s0 + $0x10] sm:$0xff]  ;;  %v1440_v1 = vld [vmem:[%s2150_s0] sm:$0xff]  ;;  %v1449_v2 = vld [vmem:[%s2150_s0 + $0x18] sm:$0xff]  ;;  %102 = vmatprep.mubr.f32.mxu0 %v1378_v4  ;;  %173 = vmatprep.mubr.f32.mxu1 %v1378_v4  ;;  %s1382_s17 = smov 127   ;;  %s1383_s18 = smov 113   ;;  %vm508_vm9 = vcmask 588800  }
   0x2   :  { %185 = vrot.lane.b32.xlu1 %v1435_v0, %s1377_s9  ;;  %181 = vrot.lane.b32.xlu0 %v1440_v1, %s1377_s9  ;;  %v1454_v3 = vld [vmem:[%s2150_s0 + $0x8] sm:$0xff]  ;;  %v33_v5 = vld [vmem:[%s2151_s5] sm:$0xff]  ;;  %s1379_s0 = smov 16   ;;  %s1380_s5 = smov 15   ;;  %v199_v9 = vshrl.u32 %v189_v8, 7  ;;  %v1530_v12 = vand.u32 127, %v189_v8 }
   0x3   :  { %38 = vmatprep.subr.mxu0 %v1454_v3  ;;  %109 = vmatprep.subr.mxu1 %v1449_v2  ;;  %s1384_s19 = smov 112   ;;  %s1386_s20 = smov 111   ;;  %v502_v7 = vld [vmem:[%s2152_s2] sm:$0xff]  ;;  %v1154_v55 = vld [vmem:[%s2153_s6 + $0x8] sm:$0xf] }
   0x4   :  { %39 = vmatpush1.msra.mxu0 %v1440_v1  ;;  %110 = vmatpush1.msra.mxu1 %v1435_v0  ;;  %v1532_v13 = vsub.s32 1, %v199_v9  ;;  %v196_v14 = vld [vmem:[%s2153_s6] sm:$0xf]  ;;  %v1153_v15 = vld [vmem:[%s2153_s6 + $0x4] sm:$0xf]  ;;  %vm191_vm1 = vcmp.lt.s32.totalorder %v1530_v12, 17 }
   0x5   :  { %1151 = vmatmul.mubr.msk.f32.vlgmr.msra.gmra.mrb[0].mxu0 %vm34_vm0, %v33_v5  ;;  %1152 = vmatmul.mubr.msk.f32.vlgmr.msra.gmra.mrb[0].mxu1 %vm34_vm0, %v33_v5  ;;  %v1541_v16 = vsub.s32 0, %v199_v9  ;;  %v1543_v17 = vsub.s32 3, %v199_v9  ;;  %v1545_v19 = vsub.s32 2, %v199_v9  ;;  %vm230_vm2 = vcmp.lt.s32.totalorder %v1530_v12, 16  ;;  %v1155_v56 = vld [vmem:[%s2153_s6 + $0xc] sm:$0xf] }
   0x6   :  { %187 = vrot.lane.b32.xlu1 %v1449_v2, %s1377_s9  ;;  %183 = vrot.lane.b32.xlu0 %v1454_v3, %s1377_s9  ;;  %v1548_v21 = vrot.slane %v196_v14, %v1532_v13  ;;  %v1552_v22 = vrot.slane %v1153_v15, %v1532_v13  ;;  %vm270_vm3 = vcmp.lt.s32.totalorder %v1530_v12, 15  ;;  %v1604_v59 = vrot.slane %v1154_v55, %v1532_v13 }
   0x7   :  { %576 = vmatprep.mubr.f32.mxu0 %v1378_v4  ;;  %647 = vmatprep.mubr.f32.mxu1 %v1378_v4  ;;  %v1557_v24 = vrot.slane %v196_v14, %v1541_v16  ;;  %v1560_v25 = vrot.slane %v196_v14, %v1543_v17  ;;  %v1563_v26 = vrot.slane %v196_v14, %v1545_v19  ;;  %vm310_vm4 = vcmp.lt.s32.totalorder %v1530_v12, 1 }
   0x8   :  { %1376 = vset.pattern.permute.xlu0 %v1385_v6  ;;  %v1570_v31 = vrot.slane %v1153_v15, %v1541_v16  ;;  %v1573_v32 = vrot.slane %v1153_v15, %v1545_v19  ;;  %v1580_v36 = vrot.slane %v1153_v15, %v1543_v17  ;;  %v1608_v60 = vrot.slane %v1155_v56, %v1532_v13 }
   0x9   :  { %v1613_v62 = vrot.slane %v1154_v55, %v1541_v16  ;;  %v1616_v63 = vrot.slane %v1154_v55, %v1545_v19  ;;  %v1619_v5 = vrot.slane %v1154_v55, %v1543_v17  ;;  %vm350_vm5 = vcmp.lt.s32.totalorder %v1530_v12, 127 }
   0xa   :  { %224 = vrot.lane.b32.xlu1 %v1454_v3, %s1379_s0  ;;  %222 = vrot.lane.b32.xlu0 %v1440_v1, %s1379_s0  ;;  %vm430_vm6 = vcmp.lt.s32.totalorder %v1530_v12, 112  ;;  %vm390_vm7 = vcmp.lt.s32.totalorder %v1530_v12, 113  ;;  %vm470_vm8 = vcmp.lt.s32.totalorder %v1530_v12, 111 }
   0xe   :  { %228 = vrot.lane.b32.xlu1 %v1449_v2, %s1379_s0  ;;  %226 = vrot.lane.b32.xlu0 %v1435_v0, %s1379_s0 }
  0x12   :  { %264 = vrot.lane.b32.xlu1 %v1454_v3, %s1380_s5  ;;  %262 = vrot.lane.b32.xlu0 %v1440_v1, %s1380_s5 }
  0x16   :  { %268 = vrot.lane.b32.xlu1 %v1449_v2, %s1380_s5  ;;  %266 = vrot.lane.b32.xlu0 %v1435_v0, %s1380_s5 }
  0x1a   :  { %304 = vrot.lane.b32.xlu1 %v1454_v3, %s1381_s16  ;;  %302 = vrot.lane.b32.xlu0 %v1440_v1, %s1381_s16 }
  0x1e   :  { %308 = vrot.lane.b32.xlu1 %v1449_v2, %s1381_s16  ;;  %306 = vrot.lane.b32.xlu0 %v1435_v0, %s1381_s16 }
  0x22   :  { %344 = vrot.lane.b32.xlu1 %v1454_v3, %s1382_s17  ;;  %342 = vrot.lane.b32.xlu0 %v1440_v1, %s1382_s17 }
  0x26   :  { %348 = vrot.lane.b32.xlu1 %v1449_v2, %s1382_s17  ;;  %346 = vrot.lane.b32.xlu0 %v1435_v0, %s1382_s17 }
  0x2a   :  { %384 = vrot.lane.b32.xlu1 %v1454_v3, %s1383_s18  ;;  %382 = vrot.lane.b32.xlu0 %v1440_v1, %s1383_s18 }
  0x2e   :  { %388 = vrot.lane.b32.xlu1 %v1449_v2, %s1383_s18  ;;  %386 = vrot.lane.b32.xlu0 %v1435_v0, %s1383_s18 }
  0x32   :  { %424 = vrot.lane.b32.xlu1 %v1454_v3, %s1384_s19  ;;  %422 = vrot.lane.b32.xlu0 %v1440_v1, %s1384_s19 }
  0x36   :  { %428 = vrot.lane.b32.xlu1 %v1449_v2, %s1384_s19  ;;  %426 = vrot.lane.b32.xlu0 %v1435_v0, %s1384_s19 }
  0x3a   :  { %464 = vrot.lane.b32.xlu1 %v1454_v3, %s1386_s20  ;;  %462 = vrot.lane.b32.xlu0 %v1440_v1, %s1386_s20 }
  0x3e   :  { %468 = vrot.lane.b32.xlu1 %v1449_v2, %s1386_s20  ;;  %466 = vrot.lane.b32.xlu0 %v1435_v0, %s1386_s20 }
  0x42   :  { %505 = vperm.xlu0 %1376, %v502_v7  }
  0x74   :  { %v186_v10 = vpop.permute.xlu1 %185  ;;  %v182_v11 = vpop.permute.xlu0 %181 }
  0x78   :  { %v188_v18 = vpop.permute.xlu1 %187  ;;  %v184_v20 = vpop.permute.xlu0 %183 }
  0x79   :  { %v194_v23 = vsel %vm191_vm1, %v182_v11, %v184_v20  ;;  %v195_v29 = vsel %vm191_vm1, %v188_v18, %v182_v11  ;;  %v192_v33 = vsel %vm191_vm1, %v186_v10, %v188_v18  ;;  %v193_v37 = vsel %vm191_vm1, %v184_v20, %v186_v10 }
  0x7a   :  { %v219_v34 = vmul.f32 %v1548_v21, %v194_v23  ;;  %v218_v38 = vmul.f32 %v1557_v24, %v195_v29  ;;  %v221_v42 = vmul.f32 %v1560_v25, %v192_v33  ;;  %v220_v46 = vmul.f32 %v1563_v26, %v193_v37 }
  0x7b   :  { %v1626_v10 = vrot.slane %v1155_v56, %v1541_v16  ;;  %v1629_v11 = vrot.slane %v1155_v56, %v1545_v19  ;;  %v1636_v20 = vrot.slane %v1155_v56, %v1543_v17 }
  0x7c   :  { %v225_v27 = vpop.permute.xlu1 %224  ;;  %v223_v28 = vpop.permute.xlu0 %222 }
  0x7d   :  { %v233_v30 = vsel %vm230_vm2, %v223_v28, %v225_v27 }
  0x7e   :  { %v259_v35 = vmul.f32 %v1552_v22, %v233_v30 }
  0x80   :  { %v229_v39 = vpop.permute.xlu1 %228  ;;  %v227_v40 = vpop.permute.xlu0 %226  ;;  %v1234_v41 = vpack.c.bf16 %v259_v35, %v219_v34 }
  0x81   :  { %v234_v43 = vsel %vm230_vm2, %v229_v39, %v223_v28  ;;  %v231_v44 = vsel %vm230_vm2, %v227_v40, %v229_v39  ;;  %v232_v45 = vsel %vm230_vm2, %v225_v27, %v227_v40 }
  0x82   :  { %v258_v47 = vmul.f32 %v1570_v31, %v234_v43  ;;  %v260_v48 = vmul.f32 %v1573_v32, %v232_v45  ;;  %v261_v49 = vmul.f32 %v1580_v36, %v231_v44  ;;  %1235 = vmatprep.subr.bf16.mxu0 %v1234_v41 }
  0x84   :  { %v1236_v50 = vpack.c.bf16 %v258_v47, %v218_v38  ;;  %v1252_v51 = vpack.c.bf16 %v260_v48, %v220_v46  ;;  %v265_v52 = vpop.permute.xlu1 %264  ;;  %v263_v53 = vpop.permute.xlu0 %262  ;;  %v1250_v54 = vpack.c.bf16 %v261_v49, %v221_v42  ;;  %v1156_v42 = vld [vmem:[%s2153_s6 + $0x10] sm:$0xf] }
  0x85   :  { %v273_v61 = vsel %vm270_vm3, %v263_v53, %v265_v52  ;;  %v1657_v48 = vrot.slane %v1156_v42, %v1541_v16  ;;  %v1660_v49 = vrot.slane %v1156_v42, %v1543_v17 }
  0x86   :  { %1237 = vmatpush1.bf16.msra.mxu0 %v1236_v50  ;;  %1251 = vmatprep.subr.bf16.mxu1 %v1250_v54  ;;  %v299_v14 = vmul.f32 %v1604_v59, %v273_v61 }
  0x87   :  { %1253 = vmatpush1.bf16.msra.mxu1 %v1252_v51  ;;  %v1665_v51 = vrot.slane %v1156_v42, %v1532_v13 }
  0x88   :  { %v269_v57 = vpop.permute.xlu1 %268  ;;  %v267_v58 = vpop.permute.xlu0 %266 }
  0x89   :  { %v274_v8 = vsel %vm270_vm3, %v269_v57, %v263_v53  ;;  %v272_v15 = vsel %vm270_vm3, %v265_v52, %v267_v58  ;;  %v271_v23 = vsel %vm270_vm3, %v267_v58, %v269_v57  ;;  %v1668_v52 = vrot.slane %v1156_v42, %v1545_v19 }
  0x8a   :  { %v298_v27 = vmul.f32 %v1613_v62, %v274_v8  ;;  %v300_v33 = vmul.f32 %v1616_v63, %v272_v15  ;;  %v301_v38 = vmul.f32 %v1619_v5, %v271_v23 }
  0x8c   :  { %v305_v6 = vpop.permute.xlu1 %304  ;;  %v303_v7 = vpop.permute.xlu0 %302 }
  0x8d   :  { %v313_v9 = vsel %vm310_vm4, %v303_v7, %v305_v6 }
  0x8e   :  { %v339_v18 = vmul.f32 %v1608_v60, %v313_v9 }
  0x90   :  { %v309_v28 = vpop.permute.xlu1 %308  ;;  %v307_v29 = vpop.permute.xlu0 %306  ;;  %v1238_v30 = vpack.c.bf16 %v339_v18, %v299_v14 }
  0x91   :  { %v314_v34 = vsel %vm310_vm4, %v309_v28, %v303_v7  ;;  %v311_v35 = vsel %vm310_vm4, %v307_v29, %v309_v28  ;;  %v312_v37 = vsel %vm310_vm4, %v305_v6, %v307_v29  ;;  %v1158_v29 = vld [vmem:[%s2153_s6 + $0x18] sm:$0xf] }
  0x92   :  { %v338_v39 = vmul.f32 %v1626_v10, %v314_v34  ;;  %v340_v40 = vmul.f32 %v1629_v11, %v312_v37  ;;  %v341_v41 = vmul.f32 %v1636_v20, %v311_v35  ;;  %1239 = vmatprep.subr.bf16.mxu0 %v1238_v30  ;;  %v1706_v37 = vrot.slane %v1158_v29, %v1541_v16 }
  0x94   :  { %v1240_v43 = vpack.c.bf16 %v338_v39, %v298_v27  ;;  %v1256_v44 = vpack.c.bf16 %v340_v40, %v300_v33  ;;  %v345_v45 = vpop.permute.xlu1 %344  ;;  %v343_v46 = vpop.permute.xlu0 %342  ;;  %v1254_v47 = vpack.c.bf16 %v341_v41, %v301_v38  ;;  %v1711_v39 = vrot.slane %v1158_v29, %v1543_v17 }
  0x95   :  { %v353_v50 = vsel %vm350_vm5, %v343_v46, %v345_v45  ;;  %v1714_v40 = vrot.slane %v1158_v29, %v1532_v13  ;;  %v1717_v41 = vrot.slane %v1158_v29, %v1545_v19 }
  0x96   :  { %1241 = vmatpush1.bf16.msra.mxu0 %v1240_v43  ;;  %1255 = vmatprep.subr.bf16.mxu1 %v1254_v47  ;;  %v378_v55 = vmul.f32 %v1657_v48, %v353_v50 }
  0x97   :  { %1257 = vmatpush1.bf16.msra.mxu1 %v1256_v44 }
  0x98   :  { %v349_v53 = vpop.permute.xlu1 %348  ;;  %v347_v54 = vpop.permute.xlu0 %346  ;;  %v1244_v23 = vpack.c.bf16 %v378_v55, %v1440_v1 }
  0x99   :  { %v354_v56 = vsel %vm350_vm5, %v349_v53, %v343_v46  ;;  %v351_v57 = vsel %vm350_vm5, %v347_v54, %v349_v53  ;;  %v352_v58 = vsel %vm350_vm5, %v345_v45, %v347_v54 }
  0x9a   :  { %v381_v61 = vmul.f32 %v1660_v49, %v354_v56  ;;  %v379_v6 = vmul.f32 %v1665_v51, %v352_v58  ;;  %v380_v7 = vmul.f32 %v1668_v52, %v351_v57 }
  0x9c   :  { %v1260_v8 = vpack.c.bf16 %v380_v7, %v1435_v0  ;;  %v385_v9 = vpop.permute.xlu1 %384  ;;  %v383_v14 = vpop.permute.xlu0 %382  ;;  %v1242_v15 = vpack.c.bf16 %v379_v6, %v1454_v3  ;;  %v1258_v18 = vpack.c.bf16 %v381_v61, %v1449_v2  ;;  %v1157_v0 = vld [vmem:[%s2153_s6 + $0x14] sm:$0xf] }
  0x9d   :  { %v1693_v1 = vrot.slane %v1157_v0, %v1543_v17  ;;  %v1696_v2 = vrot.slane %v1157_v0, %v1532_v13  ;;  %v1701_v34 = vrot.slane %v1157_v0, %v1545_v19  ;;  %v1720_v42 = vrot.slane %v1157_v0, %v1541_v16 }
  0x9e   :  { %1243 = vmatprep.subr.bf16.mxu0 %v1242_v15  ;;  %1259 = vmatprep.subr.bf16.mxu1 %v1258_v18  ;;  %v393_v44 = vsel %vm390_vm7, %v383_v14, %v385_v9 }
  0x9f   :  { %1245 = vmatpush1.bf16.msra.mxu0 %v1244_v23  ;;  %1261 = vmatpush1.bf16.msra.mxu1 %v1260_v8  ;;  %v418_v7 = vmul.f32 %v1720_v42, %v393_v44 }
  0xa0   :  { %v389_v27 = vpop.permute.xlu1 %388  ;;  %v387_v28 = vpop.permute.xlu0 %386 }
  0xa1   :  { %v394_v33 = vsel %vm390_vm7, %v389_v27, %v383_v14  ;;  %v392_v35 = vsel %vm390_vm7, %v385_v9, %v387_v28  ;;  %v391_v43 = vsel %vm390_vm7, %v387_v28, %v389_v27  ;;  %v1159_v14 = vld [vmem:[%s2153_s6 + $0x1c] sm:$0xf] }
  0xa2   :  { %v421_v45 = vmul.f32 %v1693_v1, %v394_v33  ;;  %v419_v46 = vmul.f32 %v1696_v2, %v392_v35  ;;  %v420_v57 = vmul.f32 %v1701_v34, %v391_v43  ;;  %v1745_v28 = vrot.slane %v1159_v14, %v1543_v17 }
  0xa3   :  { %v1748_v29 = vrot.slane %v1159_v14, %v1532_v13  ;;  %v1751_v0 = vrot.slane %v1159_v14, %v1545_v19 }
  0xa4   :  { %v425_v3 = vpop.permute.xlu1 %424  ;;  %v423_v30 = vpop.permute.xlu0 %422 }
  0xa5   :  { %v433_v38 = vsel %vm430_vm6, %v423_v30, %v425_v3 }
  0xa6   :  { %v458_v53 = vmul.f32 %v1706_v37, %v433_v38 }
  0xa8   :  { %v429_v47 = vpop.permute.xlu1 %428  ;;  %v427_v50 = vpop.permute.xlu0 %426  ;;  %v1248_v27 = vpack.c.bf16 %v458_v53, %v418_v7 }
  0xa9   :  { %v434_v54 = vsel %vm430_vm6, %v429_v47, %v423_v30  ;;  %v431_v55 = vsel %vm430_vm6, %v427_v50, %v429_v47  ;;  %v432_v56 = vsel %vm430_vm6, %v425_v3, %v427_v50  ;;  %v1754_v3 = vrot.slane %v1159_v14, %v1541_v16 }
  0xaa   :  { %v461_v58 = vmul.f32 %v1711_v39, %v434_v54  ;;  %v459_v61 = vmul.f32 %v1714_v40, %v432_v56  ;;  %v460_v6 = vmul.f32 %v1717_v41, %v431_v55 }
  0xac   :  { %v1264_v8 = vpack.c.bf16 %v460_v6, %v420_v57  ;;  %v465_v9 = vpop.permute.xlu1 %464  ;;  %v463_v15 = vpop.permute.xlu0 %462  ;;  %v1246_v18 = vpack.c.bf16 %v459_v61, %v419_v46  ;;  %v1262_v23 = vpack.c.bf16 %v461_v58, %v421_v45  ;;  %v180_v45 = vld [vmem:[%s2154_s1] sm:$0xff] }
  0xad   :  { %v473_v30 = vsel %vm470_vm8, %v463_v15, %v465_v9 }
  0xae   :  { %1247 = vmatprep.subr.bf16.mxu0 %v1246_v18  ;;  %1263 = vmatprep.subr.bf16.mxu1 %v1262_v23  ;;  %v498_v44 = vmul.f32 %v1754_v3, %v473_v30 }
  0xaf   :  { %1249 = vmatpush1.bf16.msra.mxu0 %v1248_v27  ;;  %1265 = vmatpush1.bf16.msra.mxu1 %v1264_v8  ;;  %v932_v8 = vld [vmem:[%s2155_s4] sm:$0xff] }
  0xb0   :  { %v469_v33 = vpop.permute.xlu1 %468  ;;  %v467_v35 = vpop.permute.xlu0 %466 }
  0xb1   :  { %v474_v17 = vsel %vm470_vm8, %v469_v33, %v463_v15  ;;  %v471_v13 = vsel %vm470_vm8, %v467_v35, %v469_v33  ;;  %v472_v19 = vsel %vm470_vm8, %v465_v9, %v467_v35 }
  0xb2   :  { %v501_v38 = vmul.f32 %v1745_v28, %v474_v17  ;;  %v499_v16 = vmul.f32 %v1748_v29, %v472_v19  ;;  %v500_v43 = vmul.f32 %v1751_v0, %v471_v13 }
  0xb4   :  { %528 = vmatprep.subr.mxu0 %v499_v16  ;;  %599 = vmatprep.subr.mxu1 %v501_v38 }
  0xb5   :  { %529 = vmatpush1.msra.mxu0 %v498_v44  ;;  %600 = vmatpush1.msra.mxu1 %v500_v43 }
  0xb6   :  { %1160 = vmatmul.mubr.msk.f32.vlgmr.msra.gmra.mrb[2].mxu0 %vm508_vm9, %v180_v45  ;;  %1161 = vmatmul.mubr.msk.f32.vlgmr.msra.gmra.mrb[2].mxu1 %vm508_vm9, %v180_v45 }
  0xb7   :  { %854 = vmatprep.mubr.f32.mxu0 %v1378_v4  ;;  %925 = vmatprep.mubr.f32.mxu1 %v1378_v4 }
  0xc1   :  { %v506_v46 = vpop.permute.xlu0 %505 }
 0x189   :  { %v649_v47 = vpop.f32.mrb[2].mxu1  ;;  %v578_v50 = vpop.f32.mrb[2].mxu0 }
 0x18a   :  { %v650_v53 = vadd.f32 %v649_v47, %v506_v46  ;;  %v579_v54 = vadd.f32 %v578_v50, %v506_v46  ;;  %v580_v55 = vpop.f32.mrb[3].mxu0  ;;  %v651_v56 = vpop.f32.mrb[3].mxu1 }
 0x18b   :  { %v581_v61 = vadd.f32 %v580_v55, %v506_v46  ;;  %v652_v4 = vadd.f32 %v651_v56, %v506_v46 }
 0x18c   :  { %v1775_v57 = vmax.f32 %v650_v53, 0.0  ;;  %v1777_v58 = vmax.f32 %v579_v54, 0.0 }
 0x18d   :  { %v1783_v6 = vmax.f32 %v581_v61, 0.0  ;;  %v1789_v7 = vmax.f32 %v652_v4, 0.0 }
 0x18e   :  { %663 = vrot.lane.b32.xlu0 %v1775_v57, %s1377_s9  ;;  %659 = vrot.lane.b32.xlu1 %v1777_v58, %s1377_s9 }
 0x192   :  { %675 = vrot.lane.b32.xlu0 %v1777_v58, %s1379_s0  ;;  %661 = vrot.lane.b32.xlu1 %v1783_v6, %s1377_s9 }
 0x196   :  { %679 = vrot.lane.b32.xlu0 %v1775_v57, %s1379_s0  ;;  %665 = vrot.lane.b32.xlu1 %v1789_v7, %s1377_s9 }
 0x19a   :  { %691 = vrot.lane.b32.xlu0 %v1777_v58, %s1380_s5  ;;  %677 = vrot.lane.b32.xlu1 %v1783_v6, %s1379_s0 }
 0x19e   :  { %695 = vrot.lane.b32.xlu0 %v1775_v57, %s1380_s5  ;;  %681 = vrot.lane.b32.xlu1 %v1789_v7, %s1379_s0 }
 0x1a2   :  { %707 = vrot.lane.b32.xlu0 %v1777_v58, %s1381_s16  ;;  %693 = vrot.lane.b32.xlu1 %v1783_v6, %s1380_s5 }
 0x1a6   :  { %711 = vrot.lane.b32.xlu0 %v1775_v57, %s1381_s16  ;;  %697 = vrot.lane.b32.xlu1 %v1789_v7, %s1380_s5 }
 0x1aa   :  { %723 = vrot.lane.b32.xlu0 %v1777_v58, %s1382_s17  ;;  %709 = vrot.lane.b32.xlu1 %v1783_v6, %s1381_s16 }
 0x1ae   :  { %727 = vrot.lane.b32.xlu0 %v1775_v57, %s1382_s17  ;;  %713 = vrot.lane.b32.xlu1 %v1789_v7, %s1381_s16 }
 0x1b2   :  { %739 = vrot.lane.b32.xlu0 %v1777_v58, %s1383_s18  ;;  %725 = vrot.lane.b32.xlu1 %v1783_v6, %s1382_s17 }
 0x1b6   :  { %743 = vrot.lane.b32.xlu0 %v1775_v57, %s1383_s18  ;;  %729 = vrot.lane.b32.xlu1 %v1789_v7, %s1382_s17 }
 0x1ba   :  { %755 = vrot.lane.b32.xlu0 %v1777_v58, %s1384_s19  ;;  %741 = vrot.lane.b32.xlu1 %v1783_v6, %s1383_s18 }
 0x1be   :  { %759 = vrot.lane.b32.xlu0 %v1775_v57, %s1384_s19  ;;  %745 = vrot.lane.b32.xlu1 %v1789_v7, %s1383_s18 }
 0x1c2   :  { %771 = vrot.lane.b32.xlu0 %v1777_v58, %s1386_s20  ;;  %757 = vrot.lane.b32.xlu1 %v1783_v6, %s1384_s19 }
 0x1c6   :  { %775 = vrot.lane.b32.xlu0 %v1775_v57, %s1386_s20  ;;  %761 = vrot.lane.b32.xlu1 %v1789_v7, %s1384_s19 }
 0x1ca   :  { %935 = vperm.xlu0 %1376, %v932_v8   ;;  %773 = vrot.lane.b32.xlu1 %v1783_v6, %s1386_s20 }
 0x1ce   :  { %777 = vrot.lane.b32.xlu1 %v1789_v7, %s1386_s20 }
 0x200   :  { %v664_v9 = vpop.permute.xlu0 %663  ;;  %v660_v14 = vpop.permute.xlu1 %659 }
 0x204   :  { %v676_v15 = vpop.permute.xlu0 %675  ;;  %v662_v18 = vpop.permute.xlu1 %661 }
 0x205   :  { %v669_v30 = vsel %vm191_vm1, %v660_v14, %v662_v18  ;;  %v668_v44 = vsel %vm191_vm1, %v662_v18, %v664_v9 }
 0x206   :  { %v672_v13 = vmul.f32 %v669_v30, %v1548_v21  ;;  %v673_v61 = vmul.f32 %v668_v44, %v1563_v26 }
 0x208   :  { %v680_v23 = vpop.permute.xlu0 %679  ;;  %v666_v27 = vpop.permute.xlu1 %665 }
 0x209   :  { %v667_v16 = vsel %vm191_vm1, %v664_v9, %v666_v27  ;;  %v670_v43 = vsel %vm191_vm1, %v666_v27, %v660_v14 }
 0x20a   :  { %v671_v53 = vmul.f32 %v670_v43, %v1557_v24  ;;  %v674_v54 = vmul.f32 %v667_v16, %v1560_v25 }
 0x20c   :  { %v692_v33 = vpop.permute.xlu0 %691  ;;  %v678_v35 = vpop.permute.xlu1 %677 }
 0x20d   :  { %v685_v17 = vsel %vm230_vm2, %v676_v15, %v678_v35  ;;  %v684_v19 = vsel %vm230_vm2, %v678_v35, %v680_v23 }
 0x20e   :  { %v688_v38 = vmul.f32 %v685_v17, %v1552_v22  ;;  %v689_v50 = vmul.f32 %v684_v19, %v1573_v32 }
 0x210   :  { %v696_v45 = vpop.permute.xlu0 %695  ;;  %v682_v46 = vpop.permute.xlu1 %681  ;;  %v1266_v47 = vpack.c.bf16 %v688_v38, %v672_v13  ;;  %v1284_v14 = vpack.c.bf16 %v689_v50, %v673_v61 }
 0x211   :  { %v683_v21 = vsel %vm230_vm2, %v680_v23, %v682_v46  ;;  %v686_v22 = vsel %vm230_vm2, %v682_v46, %v676_v15 }
 0x212   :  { %v687_v55 = vmul.f32 %v686_v22, %v1570_v31  ;;  %v690_v56 = vmul.f32 %v683_v21, %v1580_v36  ;;  %1267 = vmatprep.subr.bf16.mxu0 %v1266_v47 }
 0x214   :  { %v1268_v4 = vpack.c.bf16 %v687_v55, %v671_v53  ;;  %v708_v8 = vpop.permute.xlu0 %707  ;;  %v694_v32 = vpop.permute.xlu1 %693  ;;  %v1282_v9 = vpack.c.bf16 %v690_v56, %v674_v54 }
 0x215   :  { %v701_v24 = vsel %vm270_vm3, %v692_v33, %v694_v32  ;;  %v700_v17 = vsel %vm270_vm3, %v694_v32, %v696_v45 }
 0x216   :  { %1269 = vmatpush1.bf16.msra.mxu0 %v1268_v4  ;;  %1283 = vmatprep.subr.bf16.mxu1 %v1282_v9  ;;  %v704_v26 = vmul.f32 %v701_v24, %v1604_v59 }
 0x217   :  { %1285 = vmatpush1.bf16.msra.mxu1 %v1284_v14 }
 0x218   :  { %v712_v15 = vpop.permute.xlu0 %711  ;;  %v698_v18 = vpop.permute.xlu1 %697 }
 0x219   :  { %v699_v30 = vsel %vm270_vm3, %v696_v45, %v698_v18  ;;  %v702_v35 = vsel %vm270_vm3, %v698_v18, %v692_v33  ;;  %v705_v45 = vmul.f32 %v700_v17, %v1616_v63 }
 0x21a   :  { %v703_v43 = vmul.f32 %v702_v35, %v1613_v62  ;;  %v706_v44 = vmul.f32 %v699_v30, %v1619_v5 }
 0x21c   :  { %v724_v25 = vpop.permute.xlu0 %723  ;;  %v710_v31 = vpop.permute.xlu1 %709 }
 0x21d   :  { %v717_v36 = vsel %vm310_vm4, %v708_v8, %v710_v31  ;;  %v716_v23 = vsel %vm310_vm4, %v710_v31, %v712_v15 }
 0x21e   :  { %v720_v27 = vmul.f32 %v717_v36, %v1608_v60  ;;  %v721_v16 = vmul.f32 %v716_v23, %v1629_v11 }
 0x220   :  { %v728_v13 = vpop.permute.xlu0 %727  ;;  %v714_v19 = vpop.permute.xlu1 %713  ;;  %v1270_v38 = vpack.c.bf16 %v720_v27, %v704_v26  ;;  %v1288_v22 = vpack.c.bf16 %v721_v16, %v705_v45  ;;  %v658_v45 = vld [vmem:[%s2157_s3] sm:$0xff] }
 0x221   :  { %v715_v59 = vsel %vm310_vm4, %v712_v15, %v714_v19  ;;  %v718_v60 = vsel %vm310_vm4, %v714_v19, %v708_v8  ;;  %v959_v19 = vld [vmem:[%s2156_s7 + $0x88] sm:$0xff] }
 0x222   :  { %v719_v33 = vmul.f32 %v718_v60, %v1626_v10  ;;  %v722_v46 = vmul.f32 %v715_v59, %v1636_v20  ;;  %1271 = vmatprep.subr.bf16.mxu0 %v1270_v38 }
 0x224   :  { %v1272_v47 = vpack.c.bf16 %v719_v33, %v703_v43  ;;  %v740_v50 = vpop.permute.xlu0 %739  ;;  %v726_v11 = vpop.permute.xlu1 %725  ;;  %v1286_v21 = vpack.c.bf16 %v722_v46, %v706_v44  ;;  %v960_v43 = vld [vmem:[%s2156_s7 + $0x90] sm:$0xff]  ;;  %v961_v44 = vld [vmem:[%s2156_s7 + $0x98] sm:$0xff] }
 0x225   :  { %v732_v53 = vsel %vm350_vm5, %v726_v11, %v728_v13  ;;  %v733_v62 = vsel %vm350_vm5, %v724_v25, %v726_v11 }
 0x226   :  { %v735_v5 = vmul.f32 %v733_v62, %v1657_v48  ;;  %v736_v10 = vmul.f32 %v732_v53, %v1665_v51  ;;  %1273 = vmatpush1.bf16.msra.mxu0 %v1272_v47  ;;  %1287 = vmatprep.subr.bf16.mxu1 %v1286_v21  ;;  %v991_v21 = vld [vmem:[%s2156_s7 + $0x188] sm:$0xff]  ;;  %v1302_v53 = vpack.c.bf16 %v961_v44, %v960_v43  ;;  %v974_v62 = vld [vmem:[%s2156_s7 + $0x100] sm:$0xff] }
 0x227   :  { %1289 = vmatpush1.bf16.msra.mxu1 %v1288_v22 }
 0x228   :  { %v1276_v63 = vpack.c.bf16 %v735_v5, %v1777_v58  ;;  %v744_v20 = vpop.permute.xlu0 %743  ;;  %v730_v54 = vpop.permute.xlu1 %729  ;;  %v1274_v55 = vpack.c.bf16 %v736_v10, %v1783_v6  ;;  %v975_v5 = vld [vmem:[%s2156_s7 + $0x108] sm:$0xff]  ;;  %v962_v10 = vld [vmem:[%s2156_s7 + $0xa0] sm:$0xff] }
 0x229   :  { %v731_v56 = vsel %vm350_vm5, %v728_v13, %v730_v54  ;;  %v734_v61 = vsel %vm350_vm5, %v730_v54, %v724_v25  ;;  %v958_v13 = vld [vmem:[%s2156_s7 + $0x80] sm:$0xff]  ;;  %v963_v54 = vld [vmem:[%s2156_s7 + $0xa8] sm:$0xff] }
 0x22a   :  { %v737_v4 = vmul.f32 %v731_v56, %v1668_v52  ;;  %v738_v48 = vmul.f32 %v734_v61, %v1660_v49  ;;  %1275 = vmatprep.subr.bf16.mxu0 %v1274_v55  ;;  %v1298_v47 = vpack.c.bf16 %v959_v19, %v958_v13  ;;  %v992_v55 = vld [vmem:[%s2156_s7 + $0x190] sm:$0xff]  ;;  %v993_v56 = vld [vmem:[%s2156_s7 + $0x198] sm:$0xff] }
 0x22b   :  { %1277 = vmatpush1.bf16.msra.mxu0 %v1276_v63  ;;  %v980_v13 = vld [vmem:[%s2156_s7 + $0x130] sm:$0xff]  ;;  %v981_v19 = vld [vmem:[%s2156_s7 + $0x138] sm:$0xff] }
 0x22c   :  { %v1292_v51 = vpack.c.bf16 %v737_v4, %v1775_v57  ;;  %v756_v8 = vpop.permute.xlu0 %755  ;;  %v742_v58 = vpop.permute.xlu1 %741  ;;  %v1290_v32 = vpack.c.bf16 %v738_v48, %v1789_v7 }
 0x22d   :  { %v748_v14 = vsel %vm390_vm7, %v742_v58, %v744_v20  ;;  %v749_v52 = vsel %vm390_vm7, %v740_v50, %v742_v58  ;;  %v947_v58 = vld [vmem:[%s2156_s7 + $0x28] sm:$0xff] }
 0x22e   :  { %1291 = vmatprep.subr.bf16.mxu1 %v1290_v32  ;;  %v751_v18 = vmul.f32 %v749_v52, %v1720_v42  ;;  %v752_v7 = vmul.f32 %v748_v14, %v1696_v2  ;;  %v1334_v32 = vpack.c.bf16 %v993_v56, %v992_v55  ;;  %v965_v14 = vld [vmem:[%s2156_s7 + $0xb8] sm:$0xff]  ;;  %v994_v52 = vld [vmem:[%s2156_s7 + $0x1a0] sm:$0xff] }
 0x22f   :  { %1293 = vmatpush1.bf16.msra.mxu1 %v1292_v51  ;;  %v1332_v51 = vpack.c.bf16 %v975_v5, %v974_v62  ;;  %v955_v62 = vld [vmem:[%s2156_s7 + $0x68] sm:$0xff]  ;;  %v984_v5 = vld [vmem:[%s2156_s7 + $0x150] sm:$0xff]  ;;  %v973_v55 = vld [vmem:[%s2156_s7 + $0xf8] sm:$0xff] }
 0x230   :  { %v760_v6 = vpop.permute.xlu0 %759  ;;  %v746_v9 = vpop.permute.xlu1 %745  ;;  %v1002_v56 = vld [vmem:[%s2156_s7 + $0x1e0] sm:$0xff] }
 0x231   :  { %v747_v36 = vsel %vm390_vm7, %v744_v20, %v746_v9  ;;  %v750_v26 = vsel %vm390_vm7, %v746_v9, %v740_v50  ;;  %v990_v50 = vld [vmem:[%s2156_s7 + $0x180] sm:$0xff]  ;;  %v964_v9 = vld [vmem:[%s2156_s7 + $0xb0] sm:$0xff] }
 0x232   :  { %v753_v42 = vmul.f32 %v747_v36, %v1701_v34  ;;  %v1330_v12 = vpack.c.bf16 %v991_v21, %v990_v50  ;;  %v979_v36 = vld [vmem:[%s2156_s7 + $0x128] sm:$0xff]  ;;  %v1000_v50 = vld [vmem:[%s2156_s7 + $0x1d0] sm:$0xff] }
 0x234   :  { %v758_v15 = vpop.permute.xlu1 %757  ;;  %v772_v24 = vpop.permute.xlu0 %771 }
 0x235   :  { %v764_v49 = vsel %vm430_vm6, %v758_v15, %v760_v6  ;;  %v765_v57 = vsel %vm430_vm6, %v756_v8, %v758_v15  ;;  %v995_v15 = vld [vmem:[%s2156_s7 + $0x1a8] sm:$0xff] }
 0x236   :  { %v767_v25 = vmul.f32 %v765_v57, %v1706_v37  ;;  %v768_v31 = vmul.f32 %v764_v49, %v1714_v40  ;;  %v754_v37 = vmul.f32 %v750_v26, %v1693_v1  ;;  %v942_v1 = vld [vmem:[%s2156_s7] sm:$0xff] }
 0x237   :  { %v966_v26 = vld [vmem:[%s2156_s7 + $0xc0] sm:$0xff] }
 0x238   :  { %v1280_v23 = vpack.c.bf16 %v767_v25, %v751_v18  ;;  %v762_v27 = vpop.permute.xlu1 %761  ;;  %v1278_v30 = vpack.c.bf16 %v768_v31, %v752_v7  ;;  %v776_v38 = vpop.permute.xlu0 %775  ;;  %v948_v18 = vld [vmem:[%s2156_s7 + $0x30] sm:$0xff]  ;;  %v949_v7 = vld [vmem:[%s2156_s7 + $0x38] sm:$0xff]  ;;  %v1338_v25 = vpack.c.bf16 %v995_v15, %v994_v52  ;;  %v978_v31 = vld [vmem:[%s2156_s7 + $0x120] sm:$0xff] }
 0x239   :  { %v763_v35 = vsel %vm430_vm6, %v760_v6, %v762_v27  ;;  %v766_v2 = vsel %vm430_vm6, %v762_v27, %v756_v8  ;;  %v946_v8 = vld [vmem:[%s2156_s7 + $0x20] sm:$0xff]  ;;  %v977_v6 = vld [vmem:[%s2156_s7 + $0x118] sm:$0xff]  ;;  %v996_v27 = vld [vmem:[%s2156_s7 + $0x1b0] sm:$0xff] }
 0x23a   :  { %v769_v40 = vmul.f32 %v763_v35, %v1717_v41  ;;  %v770_v17 = vmul.f32 %v766_v2, %v1711_v39  ;;  %1279 = vmatprep.subr.bf16.mxu0 %v1278_v30  ;;  %v943_v39 = vld [vmem:[%s2156_s7 + $0x8] sm:$0xff]  ;;  %v1308_v49 = vpack.c.bf16 %v947_v58, %v946_v8  ;;  %v997_v30 = vld [vmem:[%s2156_s7 + $0x1b8] sm:$0xff]  ;;  %v1312_v35 = vpack.c.bf16 %v949_v7, %v948_v18  ;;  %v986_v58 = vld [vmem:[%s2156_s7 + $0x160] sm:$0xff] }
 0x23b   :  { %1281 = vmatpush1.bf16.msra.mxu0 %v1280_v23  ;;  %v1300_v11 = vpack.c.bf16 %v943_v39, %v942_v1  ;;  %v967_v23 = vld [vmem:[%s2156_s7 + $0xc8] sm:$0xff]  ;;  %v1340_v2 = vpack.c.bf16 %v979_v36, %v978_v31  ;;  %v1344_v39 = vpack.c.bf16 %v981_v19, %v980_v13  ;;  %v989_v52 = vld [vmem:[%s2156_s7 + $0x178] sm:$0xff] }
 0x23c   :  { %v1296_v16 = vpack.c.bf16 %v769_v40, %v753_v42  ;;  %v774_v59 = vpop.permute.xlu1 %773  ;;  %v1294_v34 = vpack.c.bf16 %v770_v17, %v754_v37  ;;  %v950_v42 = vld [vmem:[%s2156_s7 + $0x40] sm:$0xff]  ;;  %v951_v37 = vld [vmem:[%s2156_s7 + $0x48] sm:$0xff]  ;;  %v1314_v40 = vpack.c.bf16 %v967_v23, %v966_v26  ;;  %v1342_v17 = vpack.c.bf16 %v997_v30, %v996_v27 }
 0x23d   :  { %v780_v41 = vsel %vm470_vm8, %v774_v59, %v776_v38  ;;  %v781_v60 = vsel %vm470_vm8, %v772_v24, %v774_v59  ;;  %v998_v59 = vld [vmem:[%s2156_s7 + $0x1c0] sm:$0xff]  ;;  %v1316_v1 = vpack.c.bf16 %v951_v37, %v950_v42 }
 0x23e   :  { %v783_v33 = vmul.f32 %v781_v60, %v1754_v3  ;;  %v784_v46 = vmul.f32 %v780_v41, %v1748_v29  ;;  %1295 = vmatprep.subr.bf16.mxu1 %v1294_v34  ;;  %v944_v29 = vld [vmem:[%s2156_s7 + $0x10] sm:$0xff]  ;;  %v945_v3 = vld [vmem:[%s2156_s7 + $0x18] sm:$0xff]  ;;  %v999_v34 = vld [vmem:[%s2156_s7 + $0x1c8] sm:$0xff] }
 0x23f   :  { %1297 = vmatpush1.bf16.msra.mxu1 %v1296_v16  ;;  %v1304_v48 = vpack.c.bf16 %v945_v3, %v944_v29  ;;  %v969_v16 = vld [vmem:[%s2156_s7 + $0xd8] sm:$0xff]  ;;  %v952_v41 = vld [vmem:[%s2156_s7 + $0x50] sm:$0xff]  ;;  %v1346_v44 = vpack.c.bf16 %v999_v34, %v998_v59  ;;  %v954_v3 = vld [vmem:[%s2156_s7 + $0x60] sm:$0xff] }
 0x240   :  { %806 = vmatprep.subr.mxu0 %v784_v46  ;;  %v778_v22 = vpop.permute.xlu1 %777  ;;  %v953_v60 = vld [vmem:[%s2156_s7 + $0x58] sm:$0xff]  ;;  %v983_v46 = vld [vmem:[%s2156_s7 + $0x148] sm:$0xff] }
 0x241   :  { %v779_v63 = vsel %vm470_vm8, %v776_v38, %v778_v22  ;;  %v782_v20 = vsel %vm470_vm8, %v778_v22, %v772_v24  ;;  %807 = vmatpush1.msra.mxu0 %v783_v33  ;;  %v1310_v24 = vpack.c.bf16 %v965_v14, %v964_v9  ;;  %v968_v38 = vld [vmem:[%s2156_s7 + $0xd0] sm:$0xff]  ;;  %v982_v33 = vld [vmem:[%s2156_s7 + $0x140] sm:$0xff]  ;;  %v1320_v21 = vpack.c.bf16 %v953_v60, %v952_v41 }
 0x242   :  { %v785_v61 = vmul.f32 %v779_v63, %v1751_v0  ;;  %v786_v4 = vmul.f32 %v782_v20, %v1745_v28  ;;  %1162 = vmatmul.mubr.msk.f32.vlgmr.msra.gmra.mrb[0].mxu0 %vm508_vm9, %v658_v45  ;;  %1299 = vmatprep.subr.bf16.mxu0 %v1298_v47  ;;  %v1306_v0 = vpack.c.bf16 %v963_v54, %v962_v10  ;;  %v976_v28 = vld [vmem:[%s2156_s7 + $0x110] sm:$0xff]  ;;  %v971_v47 = vld [vmem:[%s2156_s7 + $0xe8] sm:$0xff]  ;;  %v985_v10 = vld [vmem:[%s2156_s7 + $0x158] sm:$0xff] }
 0x243   :  { %1301 = vmatpush3.bf16.msra.mxu0 %v1300_v11  ;;  %v1336_v57 = vpack.c.bf16 %v977_v6, %v976_v28  ;;  %v1318_v43 = vpack.c.bf16 %v969_v16, %v968_v38  ;;  %v1001_v11 = vld [vmem:[%s2156_s7 + $0x1d8] sm:$0xff]  ;;  %v1348_v29 = vpack.c.bf16 %v983_v46, %v982_v33  ;;  %v1324_v63 = vpack.c.bf16 %v955_v62, %v954_v3  ;;  %v972_v54 = vld [vmem:[%s2156_s7 + $0xf0] sm:$0xff] }
 0x244   :  { %877 = vmatprep.subr.mxu1 %v786_v4  ;;  %1303 = vmatprep.subr.bf16.mxu0 %v1302_v53  ;;  %v1350_v53 = vpack.c.bf16 %v1001_v11, %v1000_v50  ;;  %v1352_v20 = vpack.c.bf16 %v985_v10, %v984_v5  ;;  %v1003_v4 = vld [vmem:[%s2156_s7 + $0x1e8] sm:$0xff]  ;;  %v1004_v28 = vld [vmem:[%s2156_s7 + $0x1f0] sm:$0xff]  ;;  %v1005_v6 = vld [vmem:[%s2156_s7 + $0x1f8] sm:$0xff] }
 0x245   :  { %878 = vmatpush1.msra.mxu1 %v785_v61  ;;  %v1326_v61 = vpack.c.bf16 %v973_v55, %v972_v54  ;;  %v1358_v9 = vpack.c.bf16 %v1005_v6, %v1004_v28  ;;  %v988_v14 = vld [vmem:[%s2156_s7 + $0x170] sm:$0xff] }
 0x246   :  { %1163 = vmatmul.mubr.msk.f32.vlgmr.msra.gmra.mrb[0].mxu1 %vm508_vm9, %v658_v45  ;;  %1331 = vmatprep.subr.bf16.mxu1 %v1330_v12  ;;  %v970_v45 = vld [vmem:[%s2156_s7 + $0xe0] sm:$0xff]  ;;  %v956_v12 = vld [vmem:[%s2156_s7 + $0x70] sm:$0xff]  ;;  %v1360_v15 = vpack.c.bf16 %v989_v52, %v988_v14 }
 0x247   :  { %1305 = vmatpush3.bf16.msra.mxu0 %v1304_v48  ;;  %1333 = vmatpush3.bf16.msra.mxu1 %v1332_v51  ;;  %v1322_v22 = vpack.c.bf16 %v971_v47, %v970_v45  ;;  %v957_v48 = vld [vmem:[%s2156_s7 + $0x78] sm:$0xff]  ;;  %v1354_v51 = vpack.c.bf16 %v1003_v4, %v1002_v56 }
 0x248   :  { %1307 = vmatprep.subr.bf16.mxu0 %v1306_v0  ;;  %1335 = vmatprep.subr.bf16.mxu1 %v1334_v32  ;;  %v1328_v8 = vpack.c.bf16 %v957_v48, %v956_v12  ;;  %v987_v0 = vld [vmem:[%s2156_s7 + $0x168] sm:$0xff] }
 0x249   :  { %v1356_v32 = vpack.c.bf16 %v987_v0, %v986_v58 }
 0x24b   :  { %1309 = vmatpush3.bf16.msra.mxu0 %v1308_v49  ;;  %1337 = vmatpush3.bf16.msra.mxu1 %v1336_v57  ;;  %v936_v57 = vpop.permute.xlu0 %935 }
 0x24c   :  { %1311 = vmatprep.subr.bf16.mxu0 %v1310_v24  ;;  %1339 = vmatprep.subr.bf16.mxu1 %v1338_v25 }
 0x24f   :  { %1313 = vmatpush3.bf16.msra.mxu0 %v1312_v35  ;;  %1341 = vmatpush3.bf16.msra.mxu1 %v1340_v2 }
 0x250   :  { %1315 = vmatprep.subr.bf16.mxu0 %v1314_v40  ;;  %1343 = vmatprep.subr.bf16.mxu1 %v1342_v17 }
 0x253   :  { %1317 = vmatpush3.bf16.msra.mxu0 %v1316_v1  ;;  %1345 = vmatpush3.bf16.msra.mxu1 %v1344_v39 }
 0x254   :  { %1319 = vmatprep.subr.bf16.mxu0 %v1318_v43  ;;  %1347 = vmatprep.subr.bf16.mxu1 %v1346_v44 }
 0x257   :  { %1321 = vmatpush3.bf16.msra.mxu0 %v1320_v21  ;;  %1349 = vmatpush3.bf16.msra.mxu1 %v1348_v29 }
 0x258   :  { %1323 = vmatprep.subr.bf16.mxu0 %v1322_v22  ;;  %1351 = vmatprep.subr.bf16.mxu1 %v1350_v53 }
 0x25b   :  { %1325 = vmatpush3.bf16.msra.mxu0 %v1324_v63  ;;  %1353 = vmatpush3.bf16.msra.mxu1 %v1352_v20 }
 0x25c   :  { %1327 = vmatprep.subr.bf16.mxu0 %v1326_v61  ;;  %1355 = vmatprep.subr.bf16.mxu1 %v1354_v51 }
 0x25f   :  { %1329 = vmatpush3.bf16.msra.mxu0 %v1328_v8  ;;  %1357 = vmatpush3.bf16.msra.mxu1 %v1356_v32 }
 0x260   :  { %1359 = vmatprep.subr.bf16.mxu1 %v1358_v9 }
 0x263   :  { %1361 = vmatpush3.bf16.msra.mxu1 %v1360_v15 }
 0x315   :  { %v856_v49 = vpop.f32.mrb[0].mxu0 }
 0x316   :  { %v858_v18 = vpop.f32.mrb[1].mxu0  ;;  %v938_v24 = vadd.f32 %v936_v57, %v856_v49 }
 0x317   :  { %v939_v7 = vadd.f32 %v936_v57, %v858_v18 }
 0x319   :  { %v927_v25 = vpop.f32.mrb[0].mxu1  ;;  %1070 = vmatprep.mubr.f32.mxu0 %v939_v7 }
 0x31a   :  { %v929_v31 = vpop.f32.mrb[1].mxu1  ;;  %1071 = vmatmul.mubr.f32.vlgmr.msra.gmra.mrb[4].mxu0 %v938_v24  ;;  %v940_v26 = vadd.f32 %v936_v57, %v927_v25 }
 0x31b   :  { %v941_v36 = vadd.f32 %v936_v57, %v929_v31 }
 0x31d   :  { %1140 = vmatprep.mubr.f32.mxu1 %v941_v36 }
 0x31e   :  { %1141 = vmatmul.mubr.f32.vlgmr.msra.gmra.mrb[4].mxu1 %v940_v26 }
 0x3ed   :  { %v1196_v23 = vpop.f32.mrb[4].mxu0 }
 0x3ee   :  { %v1197_v27 = vpop.f32.mrb[5].mxu0 }
 0x3ef   :  { %v1198_v30 = vadd.f32 %v1197_v27, %v1196_v23 }
 0x3f1   :  { %v1231_v35 = vpop.f32.mrb[4].mxu1 }
 0x3f2   :  { %v1232_v2 = vpop.f32.mrb[5].mxu1 }
 0x3f3   :  { %v1233_v42 = vadd.f32 %v1232_v2, %v1231_v35 }
 0x3f5   :  { %v1143_v37 = vadd.f32 %v1233_v42, %v1198_v30 }
 0x3f7   :  { %1146 = vst [vmem:[%s2158_s8] sm:$0xff] %v1143_v37 }

</bundles_post_ra>
